<compile_context>
chip_gen: v6e
topology: v6e:2x2x1
jax: 0.10.0
libtpu: 0.0.40
codegen_flags: <defaults>
</compile_context>

<pallas_src>
import jax
import jax.numpy as jnp
from jax import lax
from jax.experimental import pallas as pl
from jax.experimental.pallas import tpu as pltpu


_VMEM_BUDGET = 48 * 1024 * 1024          # headroom under v7x's 64 MiB physical VMEM


def _frobenius_kernel(za_ref, zb_ref, out_ref, acc_ref):
    """Accumulate sum(c_tile**2) over the j (column-block) axis for one row block."""
    j = pl.program_id(1)

    @pl.when(j == 0)
    def _init():
        acc_ref[...] = jnp.zeros_like(acc_ref)

    # c tile = za_n_i.T @ zb_n_j ; the 1/N factor is folded into the operands.
    c_tile = lax.dot_general(
        za_ref[...], zb_ref[...],
        dimension_numbers=(((0,), (0,)), ((), ())),
        preferred_element_type=jnp.float32)                    # (td_i, td_j) f32

    # Per-lane partial sums only; cross-lane reduce deferred to finalize.
    acc_ref[...] += jnp.sum(c_tile * c_tile, axis=0, keepdims=True)   # (1, td_j)

    @pl.when(j == pl.num_programs(1) - 1)
    def _finalize():
        total = jnp.sum(acc_ref[...])
        # Lane-dense write of this row-block's partial; wrapper reads [0, 0].
        out_ref[...] = jnp.broadcast_to(jnp.reshape(total, (1, 1)), out_ref.shape)


def _shrink_div(d: int, cur: int) -> int:
    """Next smaller multiple of 128 that divides d (>= 128)."""
    cur -= 128
    while cur >= 128 and d % cur != 0:
        cur -= 128
    return max(cur, 128)


def _pick_blocks(d: int, n: int, itemsize: int, block_i: int, block_j: int):
    """Asymmetric (td_i, td_j) tile sizes, VMEM-budget aware."""
    if d % 128 != 0:
        # Small / unaligned D: one full-width tile (always legal: equals array dim).
        return d, d

    # td_i: largest 128-multiple divisor of D, <= block_i, leaving >= 2 row blocks
    # when possible so v7x's parallel i axis still splits across both TensorCores.
    cap_i = min(block_i, d // 2 if d >= 256 else d)
    cap_i = max(128, cap_i - cap_i % 128)
    td_i = cap_i
    while d % td_i != 0:
        td_i -= 128

    # td_j: largest 128-multiple divisor of td_i, <= block_j.
    cap_j = min(block_j, td_i)
    cap_j = max(128, cap_j - cap_j % 128)
    td_j = cap_j
    while td_i % td_j != 0:
        td_j -= 128

    def est(ti, tj):
        # double-buffered input blocks + f32 c tile (+ square temp) + acc/out
        return 2 * n * (ti + tj) * itemsize + 2 * ti * tj * 4 + (8 * 128 + tj) * 4

    while est(td_i, td_j) > _VMEM_BUDGET and td_i > td_j:
        td_i = _shrink_div(d, td_i)
    while est(td_i, td_j) > _VMEM_BUDGET and td_j > 128:
        td_j = _shrink_div(d, td_j)
    return td_i, td_j


def _normalize(z: jax.Array, n: int, stream_dtype) -> jax.Array:
    """(z - mean) / std (unbiased, matching torch.std default), with 1/sqrt(N) folded in."""
    z = z.astype(jnp.float32)
    mean = jnp.mean(z, axis=0, keepdims=True)
    centered = z - mean
    var = jnp.sum(centered * centered, axis=0, keepdims=True) * (1.0 / (n - 1))
    # NOTE: zero-variance features give inf/NaN, matching the PyTorch divide-by-zero.
    scale = lax.rsqrt(var) * (1.0 / float(n) ** 0.5)
    return (centered * scale).astype(stream_dtype)


def barlow_twins_loss(z_a: jax.Array, z_b: jax.Array, lambda_param: float, *,
                      block_i: int = 2048, block_j: int = 512,
                      use_bf16_matmul: bool = True) -> jax.Array:
    """Pallas implementation of BarlowTwinsCriterion.forward (single device)."""
    N, D = z_a.shape
    assert z_b.shape == (N, D)
    lam = float(lambda_param)

    stream_dtype = jnp.bfloat16 if use_bf16_matmul else jnp.float32
    itemsize = jnp.dtype(stream_dtype).itemsize

    # One-shot O(N*D) normalization prep; normalized operands materialized once.
    za_s = _normalize(z_a, N, stream_dtype)
    zb_s = _normalize(z_b, N, stream_dtype)

    td_i, td_j = _pick_blocks(D, N, itemsize, block_i, block_j)
    nblk_i = D // td_i
    nblk_j = D // td_j

    vmem_est = 2 * N * (td_i + td_j) * itemsize + 2 * td_i * td_j * 4 + (8 * 128 + td_j) * 4
    vmem_limit = min(64 << 20, max(32 << 20, int(1.25 * vmem_est)))

    cost = pl.CostEstimate(
        flops=2 * N * D * D + 2 * D * D,
        transcendentals=0,
        bytes_accessed=N * D * itemsize               # z_a column blocks: read once
        + N * D * itemsize * nblk_i                   # z_b re-streamed per row block
        + nblk_i * 8 * 128 * 4,                       # partial outputs
    )

    grid_spec = pltpu.PrefetchScalarGridSpec(
        num_scalar_prefetch=0,
        grid=(nblk_i, nblk_j),
        in_specs=[
            pl.BlockSpec((N, td_i), lambda i, j: (0, i)),   # resident z_a column block
            pl.BlockSpec((N, td_j), lambda i, j: (0, j)),   # streamed z_b column block
        ],
        out_specs=pl.BlockSpec((8, 128), lambda i, j: (i, 0)),
        scratch_shapes=[pltpu.VMEM((1, td_j), jnp.float32)],
    )

    out = pl.pallas_call(
        _frobenius_kernel,
        out_shape=jax.ShapeDtypeStruct((nblk_i * 8, 128), jnp.float32),
        grid_spec=grid_spec,
        compiler_params=pltpu.CompilerParams(
            dimension_semantics=("parallel", "arbitrary"),
            vmem_limit_bytes=vmem_limit),
        cost_estimate=cost,
    )(za_s, zb_s)

    # ||c||_F^2 from the per-row-block partials (one scalar per (8,128) tile).
    frob = jnp.sum(out.reshape(nblk_i, 8, 128)[:, 0, 0])

    # Diagonal correction from the SAME (possibly bf16) operands the MXU consumed,
    # products taken in f32 so they match the MXU's exact bf16xbf16->f32 products.
    diag = jnp.sum(za_s.astype(jnp.float32) * zb_s.astype(jnp.float32), axis=0)   # (D,)
    correction = jnp.sum((diag - 1.0) ** 2 - lam * diag * diag)

    return lam * frob + correction


def _reference_loss(z_a, z_b, lambda_param):
    """Pure-JAX reference matching the PyTorch module semantics."""
    za_n = (z_a - z_a.mean(0)) / z_a.std(0, ddof=1)
    zb_n = (z_b - z_b.mean(0)) / z_b.std(0, ddof=1)
    N, D = z_a.shape
    c = za_n.T @ zb_n / N
    c_diff = (c - jnp.eye(D)) ** 2
    eye = jnp.eye(D, dtype=bool)
    c_diff = jnp.where(eye, c_diff, c_diff * lambda_param)
    return c_diff.sum()


if __name__ == "__main__":
    lambda_param = 5e-3
    key = jax.random.PRNGKey(0)
    k_a, k_b, k_c, k_d = jax.random.split(key, 4)

    # Test 1: small shapes consistent with the module (batch=8, embedding=32);
    # single-tile fallback path, full f32 for exact comparison.
    z_a = jax.random.normal(k_a, (8, 32), dtype=jnp.float32)
    z_b = jax.random.normal(k_b, (8, 32), dtype=jnp.float32)
    loss = jax.block_until_ready(
        barlow_twins_loss(z_a, z_b, lambda_param, use_bf16_matmul=False))
    ref = _reference_loss(z_a, z_b, lambda_param)
    assert jnp.allclose(loss, ref, rtol=1e-4, atol=1e-4), (loss, ref)

    # Test 2: multi-block tiled path (batch=16, embedding=256 -> 2x2 grid of
    # 128x128 tiles), f32 stream for tight comparison against the reference.
    z_a2 = jax.random.normal(k_c, (16, 256), dtype=jnp.float32)
    z_b2 = jax.random.normal(k_d, (16, 256), dtype=jnp.float32)
    loss2 = jax.block_until_ready(
        barlow_twins_loss(z_a2, z_b2, lambda_param, use_bf16_matmul=False))
    ref2 = _reference_loss(z_a2, z_b2, lambda_param)
    assert jnp.allclose(loss2, ref2, rtol=1e-4, atol=1e-4), (loss2, ref2)

    # Test 3: default fast path (bf16 MXU inputs, f32 accumulation) on the same
    # tiled shape; looser tolerance for the bf16 rounding of the operands.
    loss3 = jax.block_until_ready(barlow_twins_loss(z_a2, z_b2, lambda_param))
    assert jnp.allclose(loss3, ref2, rtol=2e-2, atol=2e-2), (loss3, ref2)

    print("KERNEL_OK")
</pallas_src>

<mosaic_0001>
module attributes {stable_mosaic.version = 11 : i64} {
  func.func @_frobenius_kernel(%arg0: i32, %arg1: i32, %arg2: memref<8x32xf32, #tpu.memory_space<vmem>>, %arg3: memref<8x32xf32, #tpu.memory_space<vmem>>, %arg4: memref<8x128xf32, #tpu.memory_space<vmem>>, %arg5: memref<1x32xf32, #tpu.memory_space<vmem>>) attributes {dimension_semantics = [#tpu.dimension_semantics<parallel>, #tpu.dimension_semantics<arbitrary>], iteration_bounds = array<i64: 1, 1>, scalar_prefetch = 0 : i64, scratch_operands = 1 : i64, tpu.core_type = #tpu.core_type<tc>, window_params = [{transform_indices = @transform_0, window_bounds = array<i64: 8, 32>}, {transform_indices = @transform_1, window_bounds = array<i64: 8, 32>}, {transform_indices = @transform_2, window_bounds = array<i64: 8, 128>}]} {
    %c0_i32 = arith.constant 0 : i32
    %0 = arith.cmpi eq, %arg1, %c0_i32 : i32
    %1 = arith.extui %0 : i1 to i32
    %c0_i32_0 = arith.constant 0 : i32
    %2 = arith.cmpi ne, %1, %c0_i32_0 : i32
    scf.if %2 {
      %cst_11 = arith.constant 0.000000e+00 : f32
      %15 = vector.broadcast %cst_11 : f32 to vector<1x32xf32>
      %c0_12 = arith.constant 0 : index
      %c0_13 = arith.constant 0 : index
      %16 = vector.load %arg5[%c0_12, %c0_13] : memref<1x32xf32, #tpu.memory_space<vmem>>, vector<1x32xf32>
      tpu.vector_store %arg5[%c0_12, %c0_13], %15 {strides = array<i32>} : memref<1x32xf32, #tpu.memory_space<vmem>>, vector<1x32xf32>,
    } else {
    }
    %c0 = arith.constant 0 : index
    %c0_1 = arith.constant 0 : index
    %3 = vector.load %arg2[%c0, %c0_1] : memref<8x32xf32, #tpu.memory_space<vmem>>, vector<8x32xf32>
    %c0_2 = arith.constant 0 : index
    %c0_3 = arith.constant 0 : index
    %4 = vector.load %arg3[%c0_2, %c0_3] : memref<8x32xf32, #tpu.memory_space<vmem>>, vector<8x32xf32>
    %cst = arith.constant dense<0.000000e+00> : vector<32x32xf32>
    %5 = tpu.matmul %3, %4, %cst {dimension_numbers = #tpu.dot_dimension_numbers<[0], [0], [1], [1], [0, 1, 1, 1], [], []>} : vector<8x32xf32>, vector<8x32xf32>, vector<32x32xf32> -> vector<32x32xf32>
    %c0_4 = arith.constant 0 : index
    %c0_5 = arith.constant 0 : index
    %6 = vector.load %arg5[%c0_4, %c0_5] : memref<1x32xf32, #tpu.memory_space<vmem>>, vector<1x32xf32>
    %7 = arith.mulf %5, %5 : vector<32x32xf32>
    %cst_6 = arith.constant dense<0.000000e+00> : vector<32xf32>
    %8 = vector.multi_reduction <add>, %7, %cst_6 [0] : vector<32x32xf32> to vector<32xf32>
    %9 = vector.shape_cast %8 : vector<32xf32> to vector<1x32xf32>
    %10 = arith.addf %6, %9 : vector<1x32xf32>
    %c0_7 = arith.constant 0 : index
    %c0_8 = arith.constant 0 : index
    %11 = vector.load %arg5[%c0_7, %c0_8] : memref<1x32xf32, #tpu.memory_space<vmem>>, vector<1x32xf32>
    tpu.vector_store %arg5[%c0_7, %c0_8], %10 {strides = array<i32>} : memref<1x32xf32, #tpu.memory_space<vmem>>, vector<1x32xf32>,
    %c0_i32_9 = arith.constant 0 : i32
    %12 = arith.cmpi eq, %arg1, %c0_i32_9 : i32
    %13 = arith.extui %12 : i1 to i32
    %c0_i32_10 = arith.constant 0 : i32
    %14 = arith.cmpi ne, %13, %c0_i32_10 : i32
    scf.if %14 {
      %c0_11 = arith.constant 0 : index
      %c0_12 = arith.constant 0 : index
      %15 = vector.load %arg5[%c0_11, %c0_12] : memref<1x32xf32, #tpu.memory_space<vmem>>, vector<1x32xf32>
      %16 = vector.shape_cast %15 : vector<1x32xf32> to vector<1x1x32xf32>
      %cst_13 = arith.constant dense<0.000000e+00> : vector<1xf32>
      %17 = vector.multi_reduction <add>, %16, %cst_13 [1, 2] : vector<1x1x32xf32> to vector<1xf32>
      %18 = vector.shape_cast %17 : vector<1xf32> to vector<1x1x1xf32>
      %19 = vector.extract %18[0, 0, 0] : f32 from vector<1x1x1xf32>
      %20 = vector.broadcast %19 : f32 to vector<1x1xf32>
      %21 = vector.shape_cast %20 : vector<1x1xf32> to vector<1x1xf32>
      %22 = vector.broadcast %21 : vector<1x1xf32> to vector<8x128xf32>
      %c0_14 = arith.constant 0 : index
      %c0_15 = arith.constant 0 : index
      %23 = vector.load %arg4[%c0_14, %c0_15] : memref<8x128xf32, #tpu.memory_space<vmem>>, vector<8x128xf32>
      tpu.vector_store %arg4[%c0_14, %c0_15], %22 {strides = array<i32>} : memref<8x128xf32, #tpu.memory_space<vmem>>, vector<8x128xf32>,
    } else {
    }
    return
  }
  func.func @transform_0(%arg0: i32, %arg1: i32) -> (i32, i32) {
    %c0_i32 = arith.constant 0 : i32
    %c0_i32_0 = arith.constant 0 : i32
    return %c0_i32, %arg0 : i32, i32
  }
  func.func @transform_1(%arg0: i32, %arg1: i32) -> (i32, i32) {
    %c0_i32 = arith.constant 0 : i32
    %c0_i32_0 = arith.constant 0 : i32
    return %c0_i32, %arg1 : i32, i32
  }
  func.func @transform_2(%arg0: i32, %arg1: i32) -> (i32, i32) {
    %c0_i32 = arith.constant 0 : i32
    %c0_i32_0 = arith.constant 0 : i32
    return %arg0, %c0_i32 : i32, i32
  }
}

</mosaic_0001>

<bundles_post_ra>
// kernel: tpu_custom_call.1
= control target key start
LH: loop header
LB: loop body
LE: loop exit
PB: predicated region body
PF: predicated region fallthrough
CT: control target
= control target key end

     0   :  { %7 = vsyncpa [#allocation4], 0  ;;  %s350_s0 = inlined_call_operand.hbm [shape: f32[8,32], index: 0, kind: input, shape index: {}]   ;;  %s351_s1 = inlined_call_operand.hbm [shape: f32[8,32], index: 1, kind: input, shape index: {}]   ;;  %s352_s2 = inlined_call_operand.hbm [shape: f32[8,128], index: 2, kind: output, shape index: {}]  }
   0x1   :  { %8 = vsyncpa [#allocation7], 0 }
   0x2   :  { %9 = vsyncpa [#allocation5], 0  ;;  %s319_s9 = smov [#allocation3]   ;;  %s320_s11 = smov [#allocation6]  }
   0x3   :  { %s16_s10 = sshll.u32 %s319_s9, 4  ;;  %s26_s12 = sshll.u32 %s320_s11, 4  ;;  %s17_s10 = int_to_ptr.vmem [resolvable:$true] %s16_s10  ;;  %s27_s12 = int_to_ptr.vmem [resolvable:$true] %s26_s12 }
   0x4   :  { %s261_s13 = scalar_lea.vmem %s17_s10, 128  ;;  %p266_p1 = scmp.lt.s32.totalorder %s17_s10, %s17_s10 }
   0x5   :  { %p262_p0 = scmp.ne.s32.totalorder %s17_s10, %s261_s13  ;;  %p267_p2 = scmp.lt.s32.totalorder %s261_s13, %s261_s13 }
   0x7   :  { %p268_p3 = por %p267_p2, %p266_p1 }
   0x9   :  { %p269_p4 = pnand %p268_p3, %p262_p0 }
   0xb   :  { %272 = shalt.err (!%p269_p4)
}
   0xc   :  { %19 = dma.hbm_to_vmem [thread:$0]  %s350_s0, 128, %s17_s10, [#allocation4]  }
   0xd   :  { %s281_s16 = scalar_lea.vmem %s27_s12, 128  ;;  %p286_p6 = scmp.lt.s32.totalorder %s27_s12, %s27_s12 }
   0xe   :  { %p282_p5 = scmp.ne.s32.totalorder %s27_s12, %s281_s16  ;;  %p287_p7 = scmp.lt.s32.totalorder %s281_s16, %s281_s16 }
  0x10   :  { %p288_p8 = por %p287_p7, %p286_p6 }
  0x12   :  { %p289_p9 = pnand %p288_p8, %p282_p5 }
  0x14   :  { %292 = shalt.err (!%p289_p9)
}
  0x15   :  { %29 = dma.hbm_to_vmem [thread:$0]  %s351_s1, 128, %s27_s12, [#allocation7]  }
  0x16   :  { %313 = dma.done.wait [#allocation4], 128  }
  0x17   :  { %314 = vsyncadd [#allocation4], 4294967168 }
  0x18   :  { %315 = dma.done.wait [#allocation7], 128  }
  0x19   :  { %316 = vsyncadd [#allocation7], 4294967168  ;;  %v42_v0 = vld [vmem:[#allocation3] sm:$0xff]  ;;  %v43_v1 = vld [vmem:[#allocation6] sm:$0xff]  ;;  %vm76_vm0 = vcmask 64512   ;;  %vm40_vm1 = vcmask 253952  }
  0x1a   :  { %44 = vxpose.xlu0.b32.start.end [1/1] (short) (narrow) %v42_v0, 32  ;;  %237 = vmatprep.subr.mxu0 %v43_v1  ;;  %v321_v6 = vmov 0.0   ;;  %vm179_vm2 = vcmask 261120   ;;  %s322_s0 = smov [#allocation8]  }
  0x1b   :  { %238 = vmatpush3.msra.mxu0 %v43_v1  ;;  %245 = vmatprep.subr.mxu1 %v43_v1  ;;  %41 = vst.msk [vmem:[#allocation2] sm:$0x1] %vm40_vm1, %v321_v6  ;;  %s218_s1 = sshll.u32 %s322_s0, 4  ;;  %s219_s1 = int_to_ptr.vmem [resolvable:$true] %s218_s1 }
  0x1c   :  { %246 = vmatpush3.msra.mxu1 %v43_v1  ;;  %s293_s20 = scalar_lea.vmem %s219_s1, 128  ;;  %p298_p11 = scmp.lt.s32.totalorder %s219_s1, %s219_s1 }
  0x1d   :  { %p294_p10 = scmp.ne.s32.totalorder %s219_s1, %s293_s20  ;;  %p299_p12 = scmp.lt.s32.totalorder %s293_s20, %s293_s20 }
  0x1f   :  { %p300_p13 = por %p299_p12, %p298_p11 }
  0x21   :  { %p301_p0 = pnand %p300_p13, %p294_p10 }
  0x22   :  { %v174_v27 = vld [vmem:[#allocation2] sm:$0x1] }
  0x96   :  { %v60_v2 = vpop.trf.xlu0 }
  0x97   :  { %239 = vmatprep.mubr.msk.f32.mxu0 %vm76_vm0, %v60_v2 }
  0x9a   :  { %v61_v3 = vpop.trf.xlu0 }
  0x9b   :  { %240 = vmatmul.mubr.msk.f32.vlgmr.msra.gmra.mxu0 %vm76_vm0, %v61_v3 }
  0x9e   :  { %v62_v4 = vpop.trf.xlu0 }
  0x9f   :  { %242 = vmatprep.mubr.msk.f32.mxu1 %vm76_vm0, %v62_v4 }
  0xa2   :  { %v63_v5 = vpop.trf.xlu0 }
  0xa3   :  { %243 = vmatmul.mubr.msk.f32.vlgmr.msra.gmra.mxu1 %vm76_vm0, %v63_v5 }
 0x15b   :  { %v241_v7 = vpop.f32.mrf.mxu0 }
 0x15c   :  { %v176_v10 = vmul.f32 %v241_v7, %v241_v7 }
 0x15d   :  { %v155_v8 = vpop.f32.mrf.mxu0 }
 0x15e   :  { %v175_v9 = vmul.f32 %v155_v8, %v155_v8  ;;  %v181_v14 = vsel %vm179_vm2, %v176_v10, 0.0 }
 0x160   :  { %v180_v12 = vsel %vm179_vm2, %v175_v9, 0.0 }
 0x161   :  { %v182_v17 = vadd.f32 %v181_v14, %v180_v12 }
 0x163   :  { %v244_v11 = vpop.f32.mrf.mxu1 }
 0x164   :  { %v178_v15 = vmul.f32 %v244_v11, %v244_v11 }
 0x165   :  { %v165_v13 = vpop.f32.mrf.mxu1 }
 0x166   :  { %v177_v16 = vmul.f32 %v165_v13, %v165_v13  ;;  %v185_v20 = vsel %vm179_vm2, %v178_v15, 0.0 }
 0x168   :  { %v183_v18 = vsel %vm179_vm2, %v177_v16, 0.0 }
 0x169   :  { %v184_v19 = vadd.f32 %v183_v18, %v182_v17 }
 0x16b   :  { %v186_v21 = vadd.f32 %v185_v20, %v184_v19 }
 0x16d   :  { %v187_v22 = vrot.slane %v186_v21, 4 }
 0x16f   :  { %v188_v23 = vadd.f32 %v187_v22, %v186_v21 }
 0x171   :  { %v189_v24 = vrot.slane %v188_v23, 2 }
 0x173   :  { %v190_v25 = vadd.f32 %v189_v24, %v188_v23 }
 0x175   :  { %v191_v26 = vrot.slane %v190_v25, 1 }
 0x177   :  { %v192_v28 = vadd.f32 %v191_v26, %v190_v25 }
 0x179   :  { %v193_v29 = vadd.f32 %v192_v28, %v174_v27 }
 0x17b   :  { %195 = vst.msk [vmem:[#allocation2] sm:$0x1] %vm40_vm1, %v193_v29 }
 0x182   :  { %v199_v30 = vld [vmem:[#allocation2] sm:$0x1] }
 0x183   :  { %v200_v31 = vsel %vm40_vm1, %v199_v30, 0.0 }
 0x184   :  { %201 = vadd.xlane.f32.xlu0 %v200_v31 }
 0x20d   :  { %v202_v32 = vpop.xlane.xlu0 %201 }
 0x20e   :  { %v203_v33 = vrot.slane %v202_v32, 4 }
 0x210   :  { %v204_v34 = vadd.f32 %v203_v33, %v202_v32 }
 0x212   :  { %v205_v35 = vrot.slane %v204_v34, 2 }
 0x214   :  { %v206_v36 = vadd.f32 %v205_v35, %v204_v34 }
 0x216   :  { %v207_v37 = vrot.slane %v206_v36, 1 }
 0x218   :  { %v208_v38 = vadd.f32 %v207_v37, %v206_v36 }
 0x21a   :  { %247 = vpush %v208_v38 }
 0x24b   :  { %s248_s19 = spop %247 }
 0x24c   :  { %v210_v39 = vstv %s248_s19 }
 0x24d   :  { %211 = vst [vmem:[#allocation8] sm:$0xff] %v210_v39 }
 0x24e   :  { %304 = shalt.err (!%p301_p0)
}
 0x24f   :  { %221 = dma.vmem_to_hbm [thread:$0]  %s219_s1, 128, %s352_s2, [#allocation5]  }
 0x250   :  { %317 = dma.done.wait [#allocation5], 128  }
 0x251   :  { %318 = vsyncadd [#allocation5], 4294967168 }
 0x252   :  { %225 = vsyncpa [#allocation4], 1 }
 0x253   :  { %226 = vsyncpa [#allocation7], 1 }
 0x254   :  { %227 = vsyncpa [#allocation5], 1 }

</bundles_post_ra>
